<compile_context>
chip_gen: v5e
topology: v5e:2x2
jax: 0.10.0
libtpu: 0.0.40
codegen_flags: <defaults>
</compile_context>

<pallas_src>
import functools

import jax
import jax.numpy as jnp
from jax.experimental import pallas as pl
from jax.experimental.pallas import tpu as pltpu

# ----------------------------- model config ---------------------------------
D_FEATURE = 32      # deformation code size
D_IN      = 3       # xyz points
D_HIDDEN  = 64      # MLP width
N_LAYERS  = 3       # number of hidden layers in MLP
MULTIRES  = 6       # positional-encoding frequencies
D_OUT     = 3       # translation output (MLP out_ch=3)

INPUT_CH  = D_IN * (1 + 2 * MULTIRES)          # 3 + 3*2*6 = 39
D_CAT     = D_FEATURE + INPUT_CH               # 71

_TILE_ALIGN = 16    # bf16 sublane packing (16 rows / vreg)


# ----------------------------- per-chip tuning --------------------------------
def _chip_config():
    """Tile / VMEM caps per TPU generation (safe generic fallback)."""
    try:
        kind = jax.devices()[0].device_kind.lower()
    except Exception:
        kind = ""
    if "v5e" in kind or "v5 lite" in kind or "v5lite" in kind:
        # 128 MiB physical VMEM but 16 MiB default scoped limit; 1 TC.
        return dict(max_tile=2048, vmem_limit=48 << 20, min_steps=1)
    if "v6" in kind:
        # 128 MiB VMEM, 1 TC: only lever is tile size -> go big, raise scoped limit.
        return dict(max_tile=8192, vmem_limit=64 << 20, min_steps=1)
    if "7x" in kind or "v7" in kind:
        # 64 MiB VMEM (32 MiB default scoped), 2 TCs: keep >=2 balanced grid steps.
        return dict(max_tile=4096, vmem_limit=None, min_steps=2)
    # Unknown chip: large but conservative.
    return dict(max_tile=4096, vmem_limit=48 << 20, min_steps=1)


def _cdiv(a, b):
    return -(-a // b)


def _round_up(x, m):
    return ((x + m - 1) // m) * m


def _choose_tile(n, max_tile, min_steps):
    """Balanced tile: minimizes padding waste and keeps >=min_steps grid steps."""
    n_steps = max(_cdiv(n, max_tile), min_steps)
    if min_steps > 1 and n_steps % min_steps:
        n_steps = _round_up(n_steps, min_steps)     # even load across v7x's 2 TCs
    tn = min(_round_up(_cdiv(n, n_steps), _TILE_ALIGN), max_tile)
    n_steps = _cdiv(n, tn)
    return tn, n_steps


# ----------------------------- Pallas kernel --------------------------------
def _deform_mlp_kernel(n_hidden, x_ref, pts_ref, w1_ref, w_hid_ref, b_hid_ref,
                       w_out_ref, b_out_ref, out_ref):
    """x_ref: (TN, 71) bf16 merged [code | embedding]; pts_ref: (TN, 3) f32.
    w1: (71,64) bf16; w_hid: (n_hidden-1,64,64) bf16; b_hid: (n_hidden,64) f32;
    w_out: (64,3) bf16; b_out: (1,3) f32."""
    b_all = b_hid_ref[...]                                             # (n_hidden, 64) f32

    # ---- layer 1: single K=71 matmul on the merged bf16 input (f32 acc) ----
    h = jnp.dot(x_ref[...], w1_ref[...], preferred_element_type=jnp.float32)
    h = jnp.maximum(h + b_all[0:1, :], 0.0)                            # (TN, 64) f32

    # ---- remaining hidden layers (bf16 matmul, f32 accumulate / bias / ReLU) ----
    for l in range(n_hidden - 1):
        h = jnp.dot(h.astype(jnp.bfloat16), w_hid_ref[l],
                    preferred_element_type=jnp.float32) + b_all[l + 1:l + 2, :]
        h = jnp.maximum(h, 0.0)

    # ---- output layer (bf16 operands, f32 accumulate) + f32 residual ----
    translate = jnp.dot(h.astype(jnp.bfloat16), w_out_ref[...],
                        preferred_element_type=jnp.float32) + b_out_ref[...]
    out_ref[...] = pts_ref[...] + translate                            # (TN, 3) f32


# ----------------------------- embedding (XLA prologue) ----------------------
def positional_embed(x, multires):
    """Standard NeRF embedder: [x, sin(2^0 x), cos(2^0 x), ..., sin(2^{L-1} x), cos(2^{L-1} x)]."""
    # TODO(synk): get_embedder(..., use_alpha=True) normally supports an alpha_ratio
    # annealing window; the reference forward() calls embed_fn_1(x) without alpha,
    # so the plain (un-windowed) embedding is used here.
    outs = [x]
    for k in range(multires):
        freq = 2.0 ** k
        outs.append(jnp.sin(x * freq))
        outs.append(jnp.cos(x * freq))
    return jnp.concatenate(outs, axis=-1)


# ----------------------------- wrapper ---------------------------------------
def _prep_kernel_params(params):
    """Pack weights: W1 bf16, stacked hidden weights bf16, stacked hidden biases f32,
    W_out bf16, b_out f32."""
    hidden = params["hidden"]
    w1, _ = hidden[0]
    w1_bf = w1.astype(jnp.bfloat16)                                    # (71, 64)
    w_hid = jnp.stack([w for (w, _) in hidden[1:]]).astype(jnp.bfloat16)   # (n_hid-1, 64, 64)
    b_hid = jnp.concatenate([b for (_, b) in hidden], axis=0)          # (n_hid, 64) f32
    w_out, b_out = params["out"]
    return [w1_bf, w_hid, b_hid, w_out.astype(jnp.bfloat16), b_out]


def _param_spec(p):
    zeros = (0,) * p.ndim
    return pl.BlockSpec(p.shape, lambda i, _z=zeros: _z)               # resident, fetched once


def deform_network_forward(deformation_code, input_pts, alpha_ratio, params):
    """params: dict with 'hidden' = [(W, b), ...] (f32), 'out' = (W, b) (f32)."""
    del alpha_ratio  # unused by the reference forward pass (see TODO above)
    n = input_pts.shape[0]
    cfg = _chip_config()
    tn, n_steps = _choose_tile(n, cfg["max_tile"], cfg["min_steps"])
    n_pad = n_steps * tn

    pts = input_pts
    code = deformation_code
    if n_pad != n:                               # ragged point count: zero-pad, slice at the end
        pad = n_pad - n
        pts = jnp.pad(pts, ((0, pad), (0, 0)))
        code = jnp.pad(code, ((0, pad), (0, 0)))

    # One XLA prologue fusion: NeRF embedding + [code | emb] concat + bf16 cast.
    # Hands the kernel a single 142 B/pt stream feeding the K=71 first-layer matmul.
    emb = positional_embed(pts, MULTIRES)
    x_cat = jnp.concatenate([code, emb], axis=1).astype(jnp.bfloat16)  # (n_pad, 71)

    flat_params = _prep_kernel_params(params)
    param_specs = [_param_spec(p) for p in flat_params]

    n_hidden = len(params["hidden"])
    kernel = functools.partial(_deform_mlp_kernel, n_hidden)

    flops = 2 * n_pad * (D_CAT * D_HIDDEN
                         + (n_hidden - 1) * D_HIDDEN * D_HIDDEN
                         + D_HIDDEN * D_OUT)
    bytes_accessed = (n_pad * (D_CAT * 2 + D_IN * 4 + D_OUT * 4)
                      + sum(int(p.size) * p.dtype.itemsize for p in flat_params))

    out = pl.pallas_call(
        kernel,
        out_shape=jax.ShapeDtypeStruct((n_pad, D_OUT), jnp.float32),
        grid_spec=pltpu.PrefetchScalarGridSpec(
            num_scalar_prefetch=0,
            grid=(n_steps,),
            in_specs=[
                pl.BlockSpec((tn, D_CAT), lambda i: (i, 0)),   # merged bf16 [code|emb] tile
                pl.BlockSpec((tn, D_IN), lambda i: (i, 0)),    # raw f32 points tile (residual)
            ] + param_specs,
            out_specs=pl.BlockSpec((tn, D_OUT), lambda i: (i, 0)),
        ),
        compiler_params=pltpu.CompilerParams(
            dimension_semantics=("parallel",),
            vmem_limit_bytes=cfg["vmem_limit"],
        ),
        cost_estimate=pl.CostEstimate(
            flops=flops, transcendentals=0, bytes_accessed=bytes_accessed),
    )(x_cat, pts, *flat_params)

    return out[:n]


# ----------------------------- parameter init --------------------------------
def init_params(key):
    """Mirror the torch module's init: hidden weights xavier_normal_,
    output weight uniform_(0, 1e-4), biases zero.  All f32, layout (in, out)."""
    dims = [D_CAT] + [D_HIDDEN] * N_LAYERS
    hidden = []
    keys = jax.random.split(key, N_LAYERS + 1)
    for i in range(N_LAYERS):
        fan_in, fan_out = dims[i], dims[i + 1]
        std = (2.0 / (fan_in + fan_out)) ** 0.5
        w = jax.random.normal(keys[i], (fan_in, fan_out), jnp.float32) * std
        b = jnp.zeros((1, fan_out), jnp.float32)
        hidden.append((w, b))
    w_out = jax.random.uniform(keys[-1], (D_HIDDEN, D_OUT), jnp.float32,
                               minval=0.0, maxval=1e-4)
    b_out = jnp.zeros((1, D_OUT), jnp.float32)
    return {"hidden": hidden, "out": (w_out, b_out)}


# ----------------------------- reference (plain JAX, f32) ---------------------
def reference_forward(deformation_code, input_pts, alpha_ratio, params):
    del alpha_ratio
    x = positional_embed(input_pts, MULTIRES)
    h = jnp.concatenate([deformation_code, x], axis=1)
    for (w, b) in params["hidden"]:
        h = jnp.maximum(h @ w + b, 0.0)
    w_out, b_out = params["out"]
    return input_pts + (h @ w_out + b_out)


# ----------------------------- main ------------------------------------------
if __name__ == "__main__":
    key = jax.random.PRNGKey(0)
    k_code, k_pts, k_params = jax.random.split(key, 3)

    # Deliberately NOT a multiple of the tile alignment: exercises the padding path
    # and (on v7x) the 2-step balanced grid so both TensorCores are used.
    N = 300
    deformation_code = jax.random.normal(k_code, (N, D_FEATURE), jnp.float32)
    input_pts = jax.random.normal(k_pts, (N, D_IN), jnp.float32)
    alpha_ratio = jnp.float32(1.0)

    params = init_params(k_params)

    fwd = jax.jit(deform_network_forward)
    out = jax.block_until_ready(fwd(deformation_code, input_pts, alpha_ratio, params))

    ref = reference_forward(deformation_code, input_pts, alpha_ratio, params)
    assert out.shape == (N, D_IN)
    err = float(jnp.max(jnp.abs(out - ref)))
    # bf16 inputs/hidden/output-layer matmuls (f32 accumulate, f32 bias/residual)
    # against 1e-4-scale output weights -> expected diff ~1e-5.
    assert err < 2e-4, f"mismatch vs reference: max abs err {err}"

    print("KERNEL_OK")
</pallas_src>

<mosaic_0001>
module attributes {stable_mosaic.version = 11 : i64} {
  func.func @_deform_mlp_kernel(%arg0: i32, %arg1: memref<304x71xbf16, #tpu.memory_space<vmem>>, %arg2: memref<304x3xf32, #tpu.memory_space<vmem>>, %arg3: memref<71x64xbf16, #tpu.memory_space<vmem>>, %arg4: memref<2x64x64xbf16, #tpu.memory_space<vmem>>, %arg5: memref<3x64xf32, #tpu.memory_space<vmem>>, %arg6: memref<64x3xbf16, #tpu.memory_space<vmem>>, %arg7: memref<1x3xf32, #tpu.memory_space<vmem>>, %arg8: memref<304x3xf32, #tpu.memory_space<vmem>>) attributes {dimension_semantics = [#tpu.dimension_semantics<parallel>], iteration_bounds = array<i64: 1>, scalar_prefetch = 0 : i64, scratch_operands = 0 : i64, tpu.core_type = #tpu.core_type<tc>, window_params = [{transform_indices = @transform_0, window_bounds = array<i64: 304, 71>}, {transform_indices = @transform_1, window_bounds = array<i64: 304, 3>}, {pipeline_mode = #tpu.pipeline_mode<synchronous>, transform_indices = @transform_2, window_bounds = array<i64: 71, 64>}, {pipeline_mode = #tpu.pipeline_mode<synchronous>, transform_indices = @transform_3, window_bounds = array<i64: 2, 64, 64>}, {pipeline_mode = #tpu.pipeline_mode<synchronous>, transform_indices = @transform_4, window_bounds = array<i64: 3, 64>}, {pipeline_mode = #tpu.pipeline_mode<synchronous>, transform_indices = @transform_5, window_bounds = array<i64: 64, 3>}, {pipeline_mode = #tpu.pipeline_mode<synchronous>, transform_indices = @transform_6, window_bounds = array<i64: 1, 3>}, {transform_indices = @transform_7, window_bounds = array<i64: 304, 3>}]} {
    %c0 = arith.constant 0 : index
    %c0_0 = arith.constant 0 : index
    %0 = vector.load %arg5[%c0, %c0_0] : memref<3x64xf32, #tpu.memory_space<vmem>>, vector<3x64xf32>
    %c0_1 = arith.constant 0 : index
    %c0_2 = arith.constant 0 : index
    %1 = vector.load %arg1[%c0_1, %c0_2] : memref<304x71xbf16, #tpu.memory_space<vmem>>, vector<304x71xbf16>
    %c0_3 = arith.constant 0 : index
    %c0_4 = arith.constant 0 : index
    %2 = vector.load %arg3[%c0_3, %c0_4] : memref<71x64xbf16, #tpu.memory_space<vmem>>, vector<71x64xbf16>
    %cst = arith.constant dense<0.000000e+00> : vector<304x64xf32>
    %3 = tpu.matmul %1, %2, %cst {dimension_numbers = #tpu.dot_dimension_numbers<[1], [0], [0], [1], [0, 0, 1, 1], [], []>} : vector<304x71xbf16>, vector<71x64xbf16>, vector<304x64xf32> -> vector<304x64xf32>
    %4 = vector.extract_strided_slice %0 {offsets = [0, 0], sizes = [1, 64], strides = [1, 1]} : vector<3x64xf32> to vector<1x64xf32>
    %5 = vector.broadcast %4 : vector<1x64xf32> to vector<304x64xf32>
    %6 = arith.addf %3, %5 : vector<304x64xf32>
    %cst_5 = arith.constant 0.000000e+00 : f32
    %7 = vector.broadcast %cst_5 : f32 to vector<304x64xf32>
    %8 = arith.maximumf %6, %7 : vector<304x64xf32>
    %9 = arith.truncf %8 : vector<304x64xf32> to vector<304x64xbf16>
    %c0_6 = arith.constant 0 : index
    %c0_7 = arith.constant 0 : index
    %c0_8 = arith.constant 0 : index
    %10 = vector.load %arg4[%c0_6, %c0_7, %c0_8] : memref<2x64x64xbf16, #tpu.memory_space<vmem>>, vector<1x64x64xbf16>
    %11 = vector.shape_cast %10 : vector<1x64x64xbf16> to vector<64x64xbf16>
    %cst_9 = arith.constant dense<0.000000e+00> : vector<304x64xf32>
    %12 = tpu.matmul %9, %11, %cst_9 {dimension_numbers = #tpu.dot_dimension_numbers<[1], [0], [0], [1], [0, 0, 1, 1], [], []>} : vector<304x64xbf16>, vector<64x64xbf16>, vector<304x64xf32> -> vector<304x64xf32>
    %13 = vector.extract_strided_slice %0 {offsets = [1, 0], sizes = [1, 64], strides = [1, 1]} : vector<3x64xf32> to vector<1x64xf32>
    %14 = vector.broadcast %13 : vector<1x64xf32> to vector<304x64xf32>
    %15 = arith.addf %12, %14 : vector<304x64xf32>
    %cst_10 = arith.constant 0.000000e+00 : f32
    %16 = vector.broadcast %cst_10 : f32 to vector<304x64xf32>
    %17 = arith.maximumf %15, %16 : vector<304x64xf32>
    %18 = arith.truncf %17 : vector<304x64xf32> to vector<304x64xbf16>
    %c1 = arith.constant 1 : index
    %c0_11 = arith.constant 0 : index
    %c0_12 = arith.constant 0 : index
    %19 = vector.load %arg4[%c1, %c0_11, %c0_12] : memref<2x64x64xbf16, #tpu.memory_space<vmem>>, vector<1x64x64xbf16>
    %20 = vector.shape_cast %19 : vector<1x64x64xbf16> to vector<64x64xbf16>
    %cst_13 = arith.constant dense<0.000000e+00> : vector<304x64xf32>
    %21 = tpu.matmul %18, %20, %cst_13 {dimension_numbers = #tpu.dot_dimension_numbers<[1], [0], [0], [1], [0, 0, 1, 1], [], []>} : vector<304x64xbf16>, vector<64x64xbf16>, vector<304x64xf32> -> vector<304x64xf32>
    %22 = vector.extract_strided_slice %0 {offsets = [2, 0], sizes = [1, 64], strides = [1, 1]} : vector<3x64xf32> to vector<1x64xf32>
    %23 = vector.broadcast %22 : vector<1x64xf32> to vector<304x64xf32>
    %24 = arith.addf %21, %23 : vector<304x64xf32>
    %cst_14 = arith.constant 0.000000e+00 : f32
    %25 = vector.broadcast %cst_14 : f32 to vector<304x64xf32>
    %26 = arith.maximumf %24, %25 : vector<304x64xf32>
    %27 = arith.truncf %26 : vector<304x64xf32> to vector<304x64xbf16>
    %c0_15 = arith.constant 0 : index
    %c0_16 = arith.constant 0 : index
    %28 = vector.load %arg6[%c0_15, %c0_16] : memref<64x3xbf16, #tpu.memory_space<vmem>>, vector<64x3xbf16>
    %cst_17 = arith.constant dense<0.000000e+00> : vector<304x3xf32>
    %29 = tpu.matmul %27, %28, %cst_17 {dimension_numbers = #tpu.dot_dimension_numbers<[1], [0], [0], [1], [0, 0, 1, 1], [], []>} : vector<304x64xbf16>, vector<64x3xbf16>, vector<304x3xf32> -> vector<304x3xf32>
    %c0_18 = arith.constant 0 : index
    %c0_19 = arith.constant 0 : index
    %30 = vector.load %arg7[%c0_18, %c0_19] : memref<1x3xf32, #tpu.memory_space<vmem>>, vector<1x3xf32>
    %31 = vector.broadcast %30 : vector<1x3xf32> to vector<304x3xf32>
    %32 = arith.addf %29, %31 : vector<304x3xf32>
    %c0_20 = arith.constant 0 : index
    %c0_21 = arith.constant 0 : index
    %33 = vector.load %arg2[%c0_20, %c0_21] : memref<304x3xf32, #tpu.memory_space<vmem>>, vector<304x3xf32>
    %34 = arith.addf %33, %32 : vector<304x3xf32>
    %c0_22 = arith.constant 0 : index
    %c0_23 = arith.constant 0 : index
    %35 = vector.load %arg8[%c0_22, %c0_23] : memref<304x3xf32, #tpu.memory_space<vmem>>, vector<304x3xf32>
    tpu.vector_store %arg8[%c0_22, %c0_23], %34 {strides = array<i32>} : memref<304x3xf32, #tpu.memory_space<vmem>>, vector<304x3xf32>,
    return
  }
  func.func @transform_0(%arg0: i32) -> (i32, i32) {
    %c0_i32 = arith.constant 0 : i32
    %c0_i32_0 = arith.constant 0 : i32
    return %arg0, %c0_i32 : i32, i32
  }
  func.func @transform_1(%arg0: i32) -> (i32, i32) {
    %c0_i32 = arith.constant 0 : i32
    %c0_i32_0 = arith.constant 0 : i32
    return %arg0, %c0_i32 : i32, i32
  }
  func.func @transform_2(%arg0: i32) -> (i32, i32) {
    %c0_i32 = arith.constant 0 : i32
    %c0_i32_0 = arith.constant 0 : i32
    %c0_i32_1 = arith.constant 0 : i32
    return %c0_i32, %c0_i32_0 : i32, i32
  }
  func.func @transform_3(%arg0: i32) -> (i32, i32, i32) {
    %c0_i32 = arith.constant 0 : i32
    %c0_i32_0 = arith.constant 0 : i32
    %c0_i32_1 = arith.constant 0 : i32
    %c0_i32_2 = arith.constant 0 : i32
    return %c0_i32, %c0_i32_0, %c0_i32_1 : i32, i32, i32
  }
  func.func @transform_4(%arg0: i32) -> (i32, i32) {
    %c0_i32 = arith.constant 0 : i32
    %c0_i32_0 = arith.constant 0 : i32
    %c0_i32_1 = arith.constant 0 : i32
    return %c0_i32, %c0_i32_0 : i32, i32
  }
  func.func @transform_5(%arg0: i32) -> (i32, i32) {
    %c0_i32 = arith.constant 0 : i32
    %c0_i32_0 = arith.constant 0 : i32
    %c0_i32_1 = arith.constant 0 : i32
    return %c0_i32, %c0_i32_0 : i32, i32
  }
  func.func @transform_6(%arg0: i32) -> (i32, i32) {
    %c0_i32 = arith.constant 0 : i32
    %c0_i32_0 = arith.constant 0 : i32
    %c0_i32_1 = arith.constant 0 : i32
    return %c0_i32, %c0_i32_0 : i32, i32
  }
  func.func @transform_7(%arg0: i32) -> (i32, i32) {
    %c0_i32 = arith.constant 0 : i32
    %c0_i32_0 = arith.constant 0 : i32
    return %arg0, %c0_i32 : i32, i32
  }
}

</mosaic_0001>

<bundles_post_ra>
// kernel: deform_network_forward.1
= control target key start
LH: loop header
LB: loop body
LE: loop exit
PB: predicated region body
PF: predicated region fallthrough
CT: control target
= control target key end

     0   :  { %vm256_vm0 = vcmask 1042432   ;;  %vm257_vm1 = vcmask 1043456   ;;  %v1505_v1 = vmov 65535   ;;  %vm198_vm2 = vcmask 580608   ;;  %s2167_s2 = inlined_call_operand.vmem [shape: bf16[71,64], index: 2, kind: input, shape index: {}]   ;;  %s2168_s0 = inlined_call_operand.vmem [shape: bf16[304,71], index: 0, kind: input, shape index: {}]   ;;  %s2169_s3 = inlined_call_operand.vmem [shape: bf16[2,64,64], index: 3, kind: input, shape index: {}]   ;;  %s2170_s4 = inlined_call_operand.vmem [shape: f32[3,64], index: 4, kind: input, shape index: {}]   ;;  %s2171_s5 = inlined_call_operand.vmem [shape: bf16[64,3], index: 5, kind: input, shape index: {}]   ;;  %s2172_s6 = inlined_call_operand.vmem [shape: f32[1,3], index: 6, kind: input, shape index: {}]   ;;  %s2173_s1 = inlined_call_operand.vmem [shape: f32[304,3], index: 1, kind: input, shape index: {}]   ;;  %s2174_s7 = inlined_call_operand.vmem [shape: f32[304,3], index: 7, kind: output, shape index: {}]  }
   0x1   :  { %v74_v0 = vld [vmem:[%s2167_s2 + $0x20] sm:$0xf]  ;;  %v258_v2 = vsel %vm256_vm0, 4294967295, %v1505_v1  ;;  %v1490_v7 = vld [vmem:[%s2167_s2 + $0x18] sm:$0xff]  ;;  %v1489_v8 = vld [vmem:[%s2167_s2 + $0x10] sm:$0xff]  ;;  %vm457_vm3 = vcmask 523264  }
   0x2   :  { %v188_v3 = vunpack.c.l.b16 %v74_v0  ;;  %v259_v4 = vsel %vm257_vm1, %v258_v2, 0  ;;  %v1488_v9 = vld [vmem:[%s2167_s2 + $0x8] sm:$0xff]  ;;  %v1487_v10 = vld [vmem:[%s2167_s2] sm:$0xff]  ;;  %v1470_v13 = vld [vmem:[%s2168_s0 + $0x10] sm:$0xff]  ;;  %vm1201_vm4 = vcmask 23552  }
   0x3   :  { %v1468_v11 = vld [vmem:[%s2168_s0] sm:$0xff]  ;;  %v1469_v12 = vld [vmem:[%s2168_s0 + $0x8] sm:$0xff]  ;;  %v1471_v14 = vld [vmem:[%s2168_s0 + $0x18] sm:$0xff] }
   0x4   :  { %v193_v5 = vpack.c.b16 %v188_v3, %v188_v3  ;;  %v1472_v15 = vld [vmem:[%s2168_s0 + $0x20] sm:$0xff]  ;;  %v1473_v16 = vld [vmem:[%s2168_s0 + $0x28] sm:$0xff]  ;;  %v1494_v17 = vld [vmem:[%s2169_s3 + $0x18] sm:$0xff] }
   0x5   :  { %v1474_v18 = vld [vmem:[%s2168_s0 + $0x30] sm:$0xff]  ;;  %519 = vmatpush.bf16.msra.mxu1 %v1494_v17  ;;  %v1492_v20 = vld [vmem:[%s2169_s3 + $0x8] sm:$0xff]  ;;  %v1491_v21 = vld [vmem:[%s2169_s3] sm:$0xff] }
   0x6   :  { %v261_v6 = vand.u32 %v259_v4, %v193_v5  ;;  %v1493_v19 = vld [vmem:[%s2169_s3 + $0x10] sm:$0xff]  ;;  %v1475_v22 = vld [vmem:[%s2168_s0 + $0x38] sm:$0xff]  ;;  %v1476_v23 = vld [vmem:[%s2168_s0 + $0x40] sm:$0xff] }
   0x7   :  { %v1611_v24 = vld [vmem:[%s2170_s4] sm:$0x7]  ;;  %v1477_v33 = vld [vmem:[%s2168_s0 + $0x48] sm:$0xff]  ;;  %v1478_v41 = vld [vmem:[%s2168_s0 + $0x50] sm:$0xff] }
   0x8   :  { %266 = vmatpush.bf16.msra.mxu0 %v261_v6  ;;  %v1614_v26 = vperm.slane %v1611_v24, 0  ;;  %v1479_v49 = vld [vmem:[%s2168_s0 + $0x58] sm:$0xff]  ;;  %v1480_v57 = vld [vmem:[%s2168_s0 + $0x60] sm:$0xff]  ;;  %v1481_v1 = vld [vmem:[%s2168_s0 + $0x68] sm:$0xff] }
   0x9   :  { %520 = vmatpush.bf16.msra.mxu1 %v1493_v19  ;;  %v1483_v19 = vld [vmem:[%s2168_s0 + $0x78] sm:$0xff] }
   0xc   :  { %267 = vmatpush.bf16.msra.mxu0 %v1490_v7 }
   0xd   :  { %521 = vmatpush.bf16.msra.mxu1 %v1492_v20 }
  0x10   :  { %268 = vmatpush.bf16.msra.mxu0 %v1489_v8 }
  0x11   :  { %522 = vmatpush.bf16.msra.mxu1 %v1491_v21  ;;  %v1496_v21 = vld [vmem:[%s2169_s3 + $0x28] sm:$0xff] }
  0x14   :  { %269 = vmatpush.bf16.msra.mxu0 %v1488_v9  ;;  %v1482_v9 = vld [vmem:[%s2168_s0 + $0x70] sm:$0xff] }
  0x18   :  { %270 = vmatpush.bf16.msra.mxu0 %v1487_v10 }
  0x1b   :  { %1336 = vmatmul.msk.bf16.vlgmr.msra.gmra.mxu0 %vm198_vm2, %v1468_v11 }
  0x2b   :  { %1337 = vmatmul.msk.bf16.gmra.mxu0 %vm198_vm2, %v1469_v12 }
  0x3b   :  { %1338 = vmatmul.msk.bf16.gmra.mxu0 %vm198_vm2, %v1470_v13 }
  0x4b   :  { %1339 = vmatmul.msk.bf16.gmra.mxu0 %vm198_vm2, %v1471_v14  ;;  %v1498_v14 = vld [vmem:[%s2169_s3 + $0x38] sm:$0xff] }
  0x4c   :  { %771 = vmatpush.bf16.msra.mxu2 %v1498_v14 }
  0x5b   :  { %1340 = vmatmul.msk.bf16.gmra.mxu0 %vm198_vm2, %v1472_v15 }
  0x6b   :  { %1341 = vmatmul.msk.bf16.gmra.mxu0 %vm198_vm2, %v1473_v16 }
  0x7b   :  { %1342 = vmatmul.msk.bf16.gmra.mxu0 %vm198_vm2, %v1474_v18  ;;  %v1497_v18 = vld [vmem:[%s2169_s3 + $0x30] sm:$0xff] }
  0x7c   :  { %772 = vmatpush.bf16.msra.mxu2 %v1497_v18 }
  0x80   :  { %773 = vmatpush.bf16.msra.mxu2 %v1496_v21 }
  0x8b   :  { %1343 = vmatmul.msk.bf16.gmra.mxu0 %vm198_vm2, %v1475_v22  ;;  %v1495_v22 = vld [vmem:[%s2169_s3 + $0x20] sm:$0xff] }
  0x8c   :  { %774 = vmatpush.bf16.msra.mxu2 %v1495_v22 }
  0x98   :  { %v272_v25 = vpop.f32.mrf.mxu0 }
  0x99   :  { %v273_v27 = vadd.f32 %v272_v25, %v1614_v26 }
  0x9b   :  { %1344 = vmatmul.msk.bf16.gmra.mxu0 %vm198_vm2, %v1476_v23  ;;  %v367_v30 = vmax.f32 %v273_v27, 0.0 }
  0xa0   :  { %v274_v28 = vpop.f32.mrf.mxu0 }
  0xa1   :  { %v275_v29 = vadd.f32 %v274_v28, %v1614_v26 }
  0xa3   :  { %v368_v31 = vmax.f32 %v275_v29, 0.0 }
  0xa5   :  { %v405_v32 = vpack.c.bf16 %v368_v31, %v367_v30  ;;  %v1484_v31 = vld [vmem:[%s2168_s0 + $0x80] sm:$0xff] }
  0xa7   :  { %1371 = vmatmul.msk.bf16.vlgmr.msra.gmra.mxu1 %vm457_vm3, %v405_v32 }
  0xa8   :  { %v277_v34 = vpop.f32.mrf.mxu0 }
  0xa9   :  { %v278_v35 = vadd.f32 %v277_v34, %v1614_v26 }
  0xab   :  { %1345 = vmatmul.msk.bf16.gmra.mxu0 %vm198_vm2, %v1477_v33  ;;  %v369_v38 = vmax.f32 %v278_v35, 0.0 }
  0xb0   :  { %v279_v36 = vpop.f32.mrf.mxu0 }
  0xb1   :  { %v280_v37 = vadd.f32 %v279_v36, %v1614_v26 }
  0xb3   :  { %v370_v39 = vmax.f32 %v280_v37, 0.0 }
  0xb5   :  { %v406_v40 = vpack.c.bf16 %v370_v39, %v369_v38 }
  0xb7   :  { %1372 = vmatmul.msk.bf16.gmra.mxu1 %vm457_vm3, %v406_v40  ;;  %v1688_v40 = vperm.slane %v1611_v24, 1 }
  0xb8   :  { %v282_v42 = vpop.f32.mrf.mxu0 }
  0xb9   :  { %v283_v43 = vadd.f32 %v282_v42, %v1614_v26 }
  0xbb   :  { %1346 = vmatmul.msk.bf16.gmra.mxu0 %vm198_vm2, %v1478_v41  ;;  %v371_v46 = vmax.f32 %v283_v43, 0.0  ;;  %v1485_v41 = vld [vmem:[%s2168_s0 + $0x88] sm:$0xff] }
  0xc0   :  { %v284_v44 = vpop.f32.mrf.mxu0 }
  0xc1   :  { %v285_v45 = vadd.f32 %v284_v44, %v1614_v26 }
  0xc3   :  { %v372_v47 = vmax.f32 %v285_v45, 0.0 }
  0xc5   :  { %v407_v48 = vpack.c.bf16 %v372_v47, %v371_v46 }
  0xc7   :  { %1373 = vmatmul.msk.bf16.gmra.mxu1 %vm457_vm3, %v407_v48 }
  0xc8   :  { %v287_v50 = vpop.f32.mrf.mxu0 }
  0xc9   :  { %v288_v51 = vadd.f32 %v287_v50, %v1614_v26 }
  0xcb   :  { %1347 = vmatmul.msk.bf16.gmra.mxu0 %vm198_vm2, %v1479_v49  ;;  %v373_v54 = vmax.f32 %v288_v51, 0.0 }
  0xd0   :  { %v289_v52 = vpop.f32.mrf.mxu0 }
  0xd1   :  { %v290_v53 = vadd.f32 %v289_v52, %v1614_v26 }
  0xd3   :  { %v374_v55 = vmax.f32 %v290_v53, 0.0 }
  0xd5   :  { %v408_v56 = vpack.c.bf16 %v374_v55, %v373_v54 }
  0xd7   :  { %1374 = vmatmul.msk.bf16.gmra.mxu1 %vm457_vm3, %v408_v56  ;;  %v1486_v56 = vld [vmem:[%s2168_s0 + $0x90] sm:$0xff] }
  0xd8   :  { %v292_v58 = vpop.f32.mrf.mxu0 }
  0xd9   :  { %v293_v59 = vadd.f32 %v292_v58, %v1614_v26 }
  0xdb   :  { %1348 = vmatmul.msk.bf16.gmra.mxu0 %vm198_vm2, %v1480_v57  ;;  %v375_v62 = vmax.f32 %v293_v59, 0.0 }
  0xe0   :  { %v294_v60 = vpop.f32.mrf.mxu0 }
  0xe1   :  { %v295_v61 = vadd.f32 %v294_v60, %v1614_v26 }
  0xe3   :  { %v376_v63 = vmax.f32 %v295_v61, 0.0 }
  0xe5   :  { %v409_v0 = vpack.c.bf16 %v376_v63, %v375_v62 }
  0xe7   :  { %1375 = vmatmul.msk.bf16.gmra.mxu1 %vm457_vm3, %v409_v0 }
  0xe8   :  { %v297_v2 = vpop.f32.mrf.mxu0 }
  0xe9   :  { %v298_v3 = vadd.f32 %v297_v2, %v1614_v26 }
  0xeb   :  { %1349 = vmatmul.msk.bf16.gmra.mxu0 %vm198_vm2, %v1481_v1  ;;  %v377_v6 = vmax.f32 %v298_v3, 0.0 }
  0xf0   :  { %v299_v4 = vpop.f32.mrf.mxu0 }
  0xf1   :  { %v300_v5 = vadd.f32 %v299_v4, %v1614_v26 }
  0xf3   :  { %v378_v7 = vmax.f32 %v300_v5, 0.0 }
  0xf5   :  { %v410_v8 = vpack.c.bf16 %v378_v7, %v377_v6 }
  0xf7   :  { %1376 = vmatmul.msk.bf16.gmra.mxu1 %vm457_vm3, %v410_v8 }
  0xf8   :  { %v302_v10 = vpop.f32.mrf.mxu0 }
  0xf9   :  { %v303_v11 = vadd.f32 %v302_v10, %v1614_v26 }
  0xfb   :  { %1350 = vmatmul.msk.bf16.gmra.mxu0 %vm198_vm2, %v1482_v9  ;;  %v379_v15 = vmax.f32 %v303_v11, 0.0 }
 0x100   :  { %v304_v12 = vpop.f32.mrf.mxu0 }
 0x101   :  { %v305_v13 = vadd.f32 %v304_v12, %v1614_v26 }
 0x103   :  { %v380_v16 = vmax.f32 %v305_v13, 0.0 }
 0x105   :  { %v411_v17 = vpack.c.bf16 %v380_v16, %v379_v15 }
 0x107   :  { %1377 = vmatmul.msk.bf16.gmra.mxu1 %vm457_vm3, %v411_v17 }
 0x108   :  { %v307_v20 = vpop.f32.mrf.mxu0 }
 0x109   :  { %v308_v23 = vadd.f32 %v307_v20, %v1614_v26 }
 0x10b   :  { %1351 = vmatmul.msk.bf16.gmra.mxu0 %vm198_vm2, %v1483_v19  ;;  %v381_v28 = vmax.f32 %v308_v23, 0.0 }
 0x110   :  { %v309_v25 = vpop.f32.mrf.mxu0 }
 0x111   :  { %v310_v27 = vadd.f32 %v309_v25, %v1614_v26 }
 0x113   :  { %v382_v29 = vmax.f32 %v310_v27, 0.0 }
 0x115   :  { %v412_v30 = vpack.c.bf16 %v382_v29, %v381_v28 }
 0x117   :  { %1378 = vmatmul.msk.bf16.gmra.mxu1 %vm457_vm3, %v412_v30 }
 0x118   :  { %v312_v32 = vpop.f32.mrf.mxu0 }
 0x119   :  { %v313_v33 = vadd.f32 %v312_v32, %v1614_v26 }
 0x11b   :  { %1352 = vmatmul.msk.bf16.gmra.mxu0 %vm198_vm2, %v1484_v31  ;;  %v383_v36 = vmax.f32 %v313_v33, 0.0 }
 0x120   :  { %v314_v34 = vpop.f32.mrf.mxu0 }
 0x121   :  { %v315_v35 = vadd.f32 %v314_v34, %v1614_v26 }
 0x123   :  { %v384_v37 = vmax.f32 %v315_v35, 0.0 }
 0x124   :  { %v524_v38 = vpop.f32.mrf.mxu1 }
 0x125   :  { %v413_v39 = vpack.c.bf16 %v384_v37, %v383_v36  ;;  %v525_v43 = vadd.f32 %v524_v38, %v1688_v40 }
 0x127   :  { %1379 = vmatmul.msk.bf16.gmra.mxu1 %vm457_vm3, %v413_v39  ;;  %v619_v46 = vmax.f32 %v525_v43, 0.0 }
 0x128   :  { %v317_v42 = vpop.f32.mrf.mxu0 }
 0x129   :  { %v318_v47 = vadd.f32 %v317_v42, %v1614_v26 }
 0x12b   :  { %1353 = vmatmul.msk.bf16.gmra.mxu0 %vm198_vm2, %v1485_v41  ;;  %v385_v52 = vmax.f32 %v318_v47, 0.0 }
 0x12c   :  { %v526_v44 = vpop.f32.mrf.mxu1 }
 0x12d   :  { %v527_v45 = vadd.f32 %v526_v44, %v1688_v40 }
 0x12f   :  { %v620_v48 = vmax.f32 %v527_v45, 0.0 }
 0x130   :  { %v319_v49 = vpop.f32.mrf.mxu0 }
 0x131   :  { %v320_v50 = vadd.f32 %v319_v49, %v1614_v26  ;;  %v657_v51 = vpack.c.bf16 %v620_v48, %v619_v46 }
 0x133   :  { %v386_v53 = vmax.f32 %v320_v50, 0.0  ;;  %1414 = vmatmul.msk.bf16.vlgmr.msra.gmra.mxu2 %vm457_vm3, %v657_v51 }
 0x134   :  { %v529_v54 = vpop.f32.mrf.mxu1 }
 0x135   :  { %v414_v55 = vpack.c.bf16 %v386_v53, %v385_v52  ;;  %v530_v58 = vadd.f32 %v529_v54, %v1688_v40 }
 0x137   :  { %1380 = vmatmul.msk.bf16.gmra.mxu1 %vm457_vm3, %v414_v55  ;;  %v621_v61 = vmax.f32 %v530_v58, 0.0 }
 0x138   :  { %v322_v57 = vpop.f32.mrf.mxu0 }
 0x139   :  { %v323_v62 = vadd.f32 %v322_v57, %v1614_v26 }
 0x13b   :  { %1354 = vmatmul.msk.bf16.gmra.mxu0 %vm198_vm2, %v1486_v56  ;;  %v387_v3 = vmax.f32 %v323_v62, 0.0 }
 0x13c   :  { %v531_v59 = vpop.f32.mrf.mxu1 }
 0x13d   :  { %v532_v60 = vadd.f32 %v531_v59, %v1688_v40 }
 0x13f   :  { %v622_v63 = vmax.f32 %v532_v60, 0.0 }
 0x140   :  { %v324_v0 = vpop.f32.mrf.mxu0 }
 0x141   :  { %v325_v1 = vadd.f32 %v324_v0, %v1614_v26  ;;  %v658_v2 = vpack.c.bf16 %v622_v63, %v621_v61 }
 0x143   :  { %v388_v4 = vmax.f32 %v325_v1, 0.0  ;;  %1415 = vmatmul.msk.bf16.gmra.mxu2 %vm457_vm3, %v658_v2 }
 0x144   :  { %v534_v5 = vpop.f32.mrf.mxu1 }
 0x145   :  { %v415_v6 = vpack.c.bf16 %v388_v4, %v387_v3  ;;  %v535_v8 = vadd.f32 %v534_v5, %v1688_v40 }
 0x147   :  { %1381 = vmatmul.msk.bf16.gmra.mxu1 %vm457_vm3, %v415_v6  ;;  %v623_v11 = vmax.f32 %v535_v8, 0.0 }
 0x148   :  { %v327_v7 = vpop.f32.mrf.mxu0 }
 0x149   :  { %v328_v12 = vadd.f32 %v327_v7, %v1614_v26 }
 0x14b   :  { %v389_v17 = vmax.f32 %v328_v12, 0.0 }
 0x14c   :  { %v536_v9 = vpop.f32.mrf.mxu1 }
 0x14d   :  { %v537_v10 = vadd.f32 %v536_v9, %v1688_v40 }
 0x14f   :  { %v624_v13 = vmax.f32 %v537_v10, 0.0 }
 0x150   :  { %v329_v14 = vpop.f32.mrf.mxu0 }
 0x151   :  { %v330_v15 = vadd.f32 %v329_v14, %v1614_v26  ;;  %v659_v16 = vpack.c.bf16 %v624_v13, %v623_v11 }
 0x153   :  { %v390_v18 = vmax.f32 %v330_v15, 0.0  ;;  %1416 = vmatmul.msk.bf16.gmra.mxu2 %vm457_vm3, %v659_v16  ;;  %v1502_v15 = vld [vmem:[%s2171_s5 + $0x18] sm:$0xff] }
 0x154   :  { %v539_v19 = vpop.f32.mrf.mxu1  ;;  %1025 = vmatpush.bf16.msra.mxu3 %v1502_v15 }
 0x155   :  { %v416_v20 = vpack.c.bf16 %v390_v18, %v389_v17  ;;  %v540_v22 = vadd.f32 %v539_v19, %v1688_v40  ;;  %v1501_v18 = vld [vmem:[%s2171_s5 + $0x10] sm:$0xff] }
 0x157   :  { %1382 = vmatmul.msk.bf16.gmra.mxu1 %vm457_vm3, %v416_v20  ;;  %v625_v27 = vmax.f32 %v540_v22, 0.0 }
 0x158   :  { %v332_v21 = vpop.f32.mrf.mxu0  ;;  %1026 = vmatpush.bf16.msra.mxu3 %v1501_v18 }
 0x159   :  { %v333_v28 = vadd.f32 %v332_v21, %v1614_v26  ;;  %v1500_v21 = vld [vmem:[%s2171_s5 + $0x8] sm:$0xff] }
 0x15b   :  { %v391_v33 = vmax.f32 %v333_v28, 0.0 }
 0x15c   :  { %v541_v23 = vpop.f32.mrf.mxu1  ;;  %1027 = vmatpush.bf16.msra.mxu3 %v1500_v21 }
 0x15d   :  { %v542_v25 = vadd.f32 %v541_v23, %v1688_v40 }
 0x15f   :  { %v626_v29 = vmax.f32 %v542_v25, 0.0 }
 0x160   :  { %v334_v30 = vpop.f32.mrf.mxu0 }
 0x161   :  { %v335_v31 = vadd.f32 %v334_v30, %v1614_v26  ;;  %v660_v32 = vpack.c.bf16 %v626_v29, %v625_v27  ;;  %v1499_v29 = vld [vmem:[%s2171_s5] sm:$0xff] }
 0x162   :  { %1028 = vmatpush.bf16.msra.mxu3 %v1499_v29 }
 0x163   :  { %v392_v34 = vmax.f32 %v335_v31, 0.0  ;;  %1417 = vmatmul.msk.bf16.gmra.mxu2 %vm457_vm3, %v660_v32 }
 0x164   :  { %v544_v35 = vpop.f32.mrf.mxu1 }
 0x165   :  { %v417_v36 = vpack.c.bf16 %v392_v34, %v391_v33  ;;  %v545_v38 = vadd.f32 %v544_v35, %v1688_v40 }
 0x167   :  { %1383 = vmatmul.msk.bf16.gmra.mxu1 %vm457_vm3, %v417_v36  ;;  %v627_v42 = vmax.f32 %v545_v38, 0.0 }
 0x168   :  { %v337_v37 = vpop.f32.mrf.mxu0 }
 0x169   :  { %v338_v43 = vadd.f32 %v337_v37, %v1614_v26 }
 0x16b   :  { %v393_v48 = vmax.f32 %v338_v43, 0.0 }
 0x16c   :  { %v546_v39 = vpop.f32.mrf.mxu1 }
 0x16d   :  { %v547_v41 = vadd.f32 %v546_v39, %v1688_v40 }
 0x16f   :  { %v628_v44 = vmax.f32 %v547_v41, 0.0 }
 0x170   :  { %v339_v45 = vpop.f32.mrf.mxu0 }
 0x171   :  { %v340_v46 = vadd.f32 %v339_v45, %v1614_v26  ;;  %v661_v47 = vpack.c.bf16 %v628_v44, %v627_v42 }
 0x173   :  { %v394_v49 = vmax.f32 %v340_v46, 0.0  ;;  %1418 = vmatmul.msk.bf16.gmra.mxu2 %vm457_vm3, %v661_v47 }
 0x174   :  { %v549_v50 = vpop.f32.mrf.mxu1 }
 0x175   :  { %v418_v51 = vpack.c.bf16 %v394_v49, %v393_v48  ;;  %v550_v53 = vadd.f32 %v549_v50, %v1688_v40 }
 0x177   :  { %1384 = vmatmul.msk.bf16.gmra.mxu1 %vm457_vm3, %v418_v51  ;;  %v629_v56 = vmax.f32 %v550_v53, 0.0  ;;  %v1766_v53 = vperm.slane %v1611_v24, 2 }
 0x178   :  { %v342_v52 = vpop.f32.mrf.mxu0 }
 0x179   :  { %v343_v57 = vadd.f32 %v342_v52, %v1614_v26 }
 0x17b   :  { %v395_v62 = vmax.f32 %v343_v57, 0.0 }
 0x17c   :  { %v551_v54 = vpop.f32.mrf.mxu1 }
 0x17d   :  { %v552_v55 = vadd.f32 %v551_v54, %v1688_v40 }
 0x17f   :  { %v630_v58 = vmax.f32 %v552_v55, 0.0 }
 0x180   :  { %v344_v59 = vpop.f32.mrf.mxu0 }
 0x181   :  { %v345_v60 = vadd.f32 %v344_v59, %v1614_v26  ;;  %v662_v61 = vpack.c.bf16 %v630_v58, %v629_v56 }
 0x183   :  { %v396_v63 = vmax.f32 %v345_v60, 0.0  ;;  %1419 = vmatmul.msk.bf16.gmra.mxu2 %vm457_vm3, %v662_v61 }
 0x184   :  { %v554_v0 = vpop.f32.mrf.mxu1 }
 0x185   :  { %v419_v1 = vpack.c.bf16 %v396_v63, %v395_v62  ;;  %v555_v3 = vadd.f32 %v554_v0, %v1688_v40 }
 0x187   :  { %1385 = vmatmul.msk.bf16.gmra.mxu1 %vm457_vm3, %v419_v1  ;;  %v631_v6 = vmax.f32 %v555_v3, 0.0 }
 0x188   :  { %v347_v2 = vpop.f32.mrf.mxu0 }
 0x189   :  { %v348_v7 = vadd.f32 %v347_v2, %v1614_v26 }
 0x18b   :  { %v397_v12 = vmax.f32 %v348_v7, 0.0 }
 0x18c   :  { %v556_v4 = vpop.f32.mrf.mxu1 }
 0x18d   :  { %v557_v5 = vadd.f32 %v556_v4, %v1688_v40 }
 0x18f   :  { %v632_v8 = vmax.f32 %v557_v5, 0.0 }
 0x190   :  { %v349_v9 = vpop.f32.mrf.mxu0 }
 0x191   :  { %v350_v10 = vadd.f32 %v349_v9, %v1614_v26  ;;  %v663_v11 = vpack.c.bf16 %v632_v8, %v631_v6 }
 0x193   :  { %v398_v13 = vmax.f32 %v350_v10, 0.0  ;;  %1420 = vmatmul.msk.bf16.gmra.mxu2 %vm457_vm3, %v663_v11 }
 0x194   :  { %v559_v14 = vpop.f32.mrf.mxu1 }
 0x195   :  { %v420_v16 = vpack.c.bf16 %v398_v13, %v397_v12  ;;  %v560_v19 = vadd.f32 %v559_v14, %v1688_v40 }
 0x197   :  { %1386 = vmatmul.msk.bf16.gmra.mxu1 %vm457_vm3, %v420_v16  ;;  %v633_v23 = vmax.f32 %v560_v19, 0.0 }
 0x198   :  { %v352_v17 = vpop.f32.mrf.mxu0 }
 0x199   :  { %v353_v25 = vadd.f32 %v352_v17, %v1614_v26 }
 0x19b   :  { %v399_v32 = vmax.f32 %v353_v25, 0.0 }
 0x19c   :  { %v561_v20 = vpop.f32.mrf.mxu1 }
 0x19d   :  { %v562_v22 = vadd.f32 %v561_v20, %v1688_v40 }
 0x19f   :  { %v634_v27 = vmax.f32 %v562_v22, 0.0 }
 0x1a0   :  { %v354_v28 = vpop.f32.mrf.mxu0 }
 0x1a1   :  { %v664_v30 = vpack.c.bf16 %v634_v27, %v633_v23  ;;  %v355_v31 = vadd.f32 %v354_v28, %v1614_v26 }
 0x1a3   :  { %v400_v33 = vmax.f32 %v355_v31, 0.0  ;;  %1421 = vmatmul.msk.bf16.gmra.mxu2 %vm457_vm3, %v664_v30 }
 0x1a4   :  { %v564_v34 = vpop.f32.mrf.mxu1 }
 0x1a5   :  { %v421_v35 = vpack.c.bf16 %v400_v33, %v399_v32  ;;  %v565_v37 = vadd.f32 %v564_v34, %v1688_v40 }
 0x1a7   :  { %1387 = vmatmul.msk.bf16.gmra.mxu1 %vm457_vm3, %v421_v35  ;;  %v635_v41 = vmax.f32 %v565_v37, 0.0 }
 0x1a8   :  { %v357_v36 = vpop.f32.mrf.mxu0 }
 0x1a9   :  { %v358_v42 = vadd.f32 %v357_v36, %v1614_v26 }
 0x1ab   :  { %v401_v47 = vmax.f32 %v358_v42, 0.0 }
 0x1ac   :  { %v566_v38 = vpop.f32.mrf.mxu1 }
 0x1ad   :  { %v567_v39 = vadd.f32 %v566_v38, %v1688_v40 }
 0x1af   :  { %v636_v43 = vmax.f32 %v567_v39, 0.0 }
 0x1b0   :  { %v359_v44 = vpop.f32.mrf.mxu0 }
 0x1b1   :  { %v665_v45 = vpack.c.bf16 %v636_v43, %v635_v41  ;;  %v360_v46 = vadd.f32 %v359_v44, %v1614_v26 }
 0x1b3   :  { %v402_v48 = vmax.f32 %v360_v46, 0.0  ;;  %1422 = vmatmul.msk.bf16.gmra.mxu2 %vm457_vm3, %v665_v45 }
 0x1b4   :  { %v569_v49 = vpop.f32.mrf.mxu1 }
 0x1b5   :  { %v422_v50 = vpack.c.bf16 %v402_v48, %v401_v47  ;;  %v570_v54 = vadd.f32 %v569_v49, %v1688_v40 }
 0x1b6   :  { %v776_v51 = vpop.f32.mrf.mxu2 }
 0x1b7   :  { %1388 = vmatmul.msk.bf16.gmra.mxu1 %vm457_vm3, %v422_v50  ;;  %v777_v56 = vadd.f32 %v776_v51, %v1766_v53  ;;  %v637_v59 = vmax.f32 %v570_v54, 0.0 }
 0x1b8   :  { %v362_v52 = vpop.f32.mrf.mxu0 }
 0x1b9   :  { %v363_v60 = vadd.f32 %v362_v52, %v1614_v26  ;;  %v871_v0 = vmax.f32 %v777_v56, 0.0 }
 0x1bb   :  { %v403_v3 = vmax.f32 %v363_v60, 0.0 }
 0x1bc   :  { %v571_v55 = vpop.f32.mrf.mxu1 }
 0x1bd   :  { %v572_v57 = vadd.f32 %v571_v55, %v1688_v40 }
 0x1be   :  { %v778_v58 = vpop.f32.mrf.mxu2 }
 0x1bf   :  { %v638_v61 = vmax.f32 %v572_v57, 0.0  ;;  %v779_v62 = vadd.f32 %v778_v58, %v1766_v53 }
 0x1c0   :  { %v364_v63 = vpop.f32.mrf.mxu0 }
 0x1c1   :  { %v666_v1 = vpack.c.bf16 %v638_v61, %v637_v59  ;;  %v872_v2 = vmax.f32 %v779_v62, 0.0  ;;  %v365_v24 = vadd.f32 %v364_v63, %v1614_v26 }
 0x1c3   :  { %v404_v4 = vmax.f32 %v365_v24, 0.0  ;;  %1423 = vmatmul.msk.bf16.gmra.mxu2 %vm457_vm3, %v666_v1  ;;  %v909_v5 = vpack.c.bf16 %v872_v2, %v871_v0 }
 0x1c4   :  { %v574_v6 = vpop.f32.mrf.mxu1 }
 0x1c5   :  { %v423_v7 = vpack.c.bf16 %v404_v4, %v403_v3  ;;  %1449 = vmatmul.msk.bf16.vlgmr.msra.gmra.mxu3 %vm457_vm3, %v909_v5  ;;  %v575_v9 = vadd.f32 %v574_v6, %v1688_v40 }
 0x1c6   :  { %v781_v8 = vpop.f32.mrf.mxu2 }
 0x1c7   :  { %1389 = vmatmul.msk.bf16.gmra.mxu1 %vm457_vm3, %v423_v7  ;;  %v782_v11 = vadd.f32 %v781_v8, %v1766_v53  ;;  %v639_v13 = vmax.f32 %v575_v9, 0.0 }
 0x1c9   :  { %v873_v16 = vmax.f32 %v782_v11, 0.0 }
 0x1cc   :  { %v576_v10 = vpop.f32.mrf.mxu1 }
 0x1cd   :  { %v577_v12 = vadd.f32 %v576_v10, %v1688_v40 }
 0x1ce   :  { %v783_v26 = vpop.f32.mrf.mxu2 }
 0x1cf   :  { %v640_v14 = vmax.f32 %v577_v12, 0.0  ;;  %v784_v15 = vadd.f32 %v783_v26, %v1766_v53 }
 0x1d1   :  { %v667_v17 = vpack.c.bf16 %v640_v14, %v639_v13  ;;  %v874_v18 = vmax.f32 %v784_v15, 0.0 }
 0x1d3   :  { %1424 = vmatmul.msk.bf16.gmra.mxu2 %vm457_vm3, %v667_v17  ;;  %v910_v19 = vpack.c.bf16 %v874_v18, %v873_v16 }
 0x1d4   :  { %v579_v20 = vpop.f32.mrf.mxu1 }
 0x1d5   :  { %1450 = vmatmul.msk.bf16.gmra.mxu3 %vm457_vm3, %v910_v19  ;;  %v580_v22 = vadd.f32 %v579_v20, %v1688_v40 }
 0x1d6   :  { %v786_v21 = vpop.f32.mrf.mxu2 }
 0x1d7   :  { %v787_v25 = vadd.f32 %v786_v21, %v1766_v53  ;;  %v641_v29 = vmax.f32 %v580_v22, 0.0 }
 0x1d9   :  { %v875_v32 = vmax.f32 %v787_v25, 0.0 }
 0x1dc   :  { %v581_v23 = vpop.f32.mrf.mxu1 }
 0x1dd   :  { %v582_v27 = vadd.f32 %v581_v23, %v1688_v40 }
 0x1de   :  { %v788_v28 = vpop.f32.mrf.mxu2 }
 0x1df   :  { %v642_v30 = vmax.f32 %v582_v27, 0.0  ;;  %v789_v31 = vadd.f32 %v788_v28, %v1766_v53 }
 0x1e1   :  { %v668_v33 = vpack.c.bf16 %v642_v30, %v641_v29  ;;  %v876_v34 = vmax.f32 %v789_v31, 0.0 }
 0x1e3   :  { %1425 = vmatmul.msk.bf16.gmra.mxu2 %vm457_vm3, %v668_v33  ;;  %v911_v35 = vpack.c.bf16 %v876_v34, %v875_v32 }
 0x1e4   :  { %v584_v36 = vpop.f32.mrf.mxu1 }
 0x1e5   :  { %1451 = vmatmul.msk.bf16.gmra.mxu3 %vm457_vm3, %v911_v35  ;;  %v585_v38 = vadd.f32 %v584_v36, %v1688_v40 }
 0x1e6   :  { %v791_v37 = vpop.f32.mrf.mxu2 }
 0x1e7   :  { %v792_v41 = vadd.f32 %v791_v37, %v1766_v53  ;;  %v643_v44 = vmax.f32 %v585_v38, 0.0 }
 0x1e9   :  { %v877_v47 = vmax.f32 %v792_v41, 0.0 }
 0x1ec   :  { %v586_v39 = vpop.f32.mrf.mxu1 }
 0x1ed   :  { %v587_v42 = vadd.f32 %v586_v39, %v1688_v40 }
 0x1ee   :  { %v793_v43 = vpop.f32.mrf.mxu2 }
 0x1ef   :  { %v644_v45 = vmax.f32 %v587_v42, 0.0  ;;  %v794_v46 = vadd.f32 %v793_v43, %v1766_v53 }
 0x1f1   :  { %v669_v48 = vpack.c.bf16 %v644_v45, %v643_v44  ;;  %v878_v49 = vmax.f32 %v794_v46, 0.0 }
 0x1f3   :  { %1426 = vmatmul.msk.bf16.gmra.mxu2 %vm457_vm3, %v669_v48  ;;  %v912_v50 = vpack.c.bf16 %v878_v49, %v877_v47 }
 0x1f4   :  { %v589_v51 = vpop.f32.mrf.mxu1 }
 0x1f5   :  { %1452 = vmatmul.msk.bf16.gmra.mxu3 %vm457_vm3, %v912_v50  ;;  %v590_v54 = vadd.f32 %v589_v51, %v1688_v40 }
 0x1f6   :  { %v796_v52 = vpop.f32.mrf.mxu2 }
 0x1f7   :  { %v797_v56 = vadd.f32 %v796_v52, %v1766_v53  ;;  %v645_v59 = vmax.f32 %v590_v54, 0.0 }
 0x1f9   :  { %v879_v62 = vmax.f32 %v797_v56, 0.0 }
 0x1fc   :  { %v591_v55 = vpop.f32.mrf.mxu1 }
 0x1fd   :  { %v592_v57 = vadd.f32 %v591_v55, %v1688_v40 }
 0x1fe   :  { %v798_v58 = vpop.f32.mrf.mxu2 }
 0x1ff   :  { %v646_v60 = vmax.f32 %v592_v57, 0.0  ;;  %v799_v61 = vadd.f32 %v798_v58, %v1766_v53 }
 0x201   :  { %v670_v63 = vpack.c.bf16 %v646_v60, %v645_v59  ;;  %v880_v0 = vmax.f32 %v799_v61, 0.0  ;;  %v1828_v61 = vld [vmem:[%s2172_s6] ss:$0 sm:$0xff] }
 0x203   :  { %1427 = vmatmul.msk.bf16.gmra.mxu2 %vm457_vm3, %v670_v63  ;;  %v913_v1 = vpack.c.bf16 %v880_v0, %v879_v62  ;;  %v1125_v0 = vld [vmem:[%s2173_s1] sm:$0xff] }
 0x204   :  { %v594_v2 = vpop.f32.mrf.mxu1 }
 0x205   :  { %1453 = vmatmul.msk.bf16.gmra.mxu3 %vm457_vm3, %v913_v1  ;;  %v595_v3 = vadd.f32 %v594_v2, %v1688_v40 }
 0x206   :  { %v801_v24 = vpop.f32.mrf.mxu2 }
 0x207   :  { %v802_v5 = vadd.f32 %v801_v24, %v1766_v53  ;;  %v647_v8 = vmax.f32 %v595_v3, 0.0 }
 0x209   :  { %v881_v11 = vmax.f32 %v802_v5, 0.0 }
 0x20c   :  { %v596_v4 = vpop.f32.mrf.mxu1 }
 0x20d   :  { %v597_v6 = vadd.f32 %v596_v4, %v1688_v40 }
 0x20e   :  { %v803_v7 = vpop.f32.mrf.mxu2 }
 0x20f   :  { %v648_v9 = vmax.f32 %v597_v6, 0.0  ;;  %v804_v10 = vadd.f32 %v803_v7, %v1766_v53 }
 0x211   :  { %v671_v12 = vpack.c.bf16 %v648_v9, %v647_v8  ;;  %v882_v26 = vmax.f32 %v804_v10, 0.0 }
 0x213   :  { %1428 = vmatmul.msk.bf16.gmra.mxu2 %vm457_vm3, %v671_v12  ;;  %v914_v13 = vpack.c.bf16 %v882_v26, %v881_v11  ;;  %v1126_v11 = vld [vmem:[%s2173_s1 + $0x8] sm:$0xff] }
 0x214   :  { %v599_v14 = vpop.f32.mrf.mxu1 }
 0x215   :  { %1454 = vmatmul.msk.bf16.gmra.mxu3 %vm457_vm3, %v914_v13  ;;  %v600_v16 = vadd.f32 %v599_v14, %v1688_v40 }
 0x216   :  { %v806_v15 = vpop.f32.mrf.mxu2 }
 0x217   :  { %v807_v18 = vadd.f32 %v806_v15, %v1766_v53  ;;  %v649_v21 = vmax.f32 %v600_v16, 0.0 }
 0x219   :  { %v883_v25 = vmax.f32 %v807_v18, 0.0  ;;  %v1127_v18 = vld [vmem:[%s2173_s1 + $0x10] sm:$0xff] }
 0x21c   :  { %v601_v17 = vpop.f32.mrf.mxu1 }
 0x21d   :  { %v602_v19 = vadd.f32 %v601_v17, %v1688_v40 }
 0x21e   :  { %v808_v20 = vpop.f32.mrf.mxu2 }
 0x21f   :  { %v650_v22 = vmax.f32 %v602_v19, 0.0  ;;  %v809_v23 = vadd.f32 %v808_v20, %v1766_v53 }
 0x221   :  { %v672_v27 = vpack.c.bf16 %v650_v22, %v649_v21  ;;  %v884_v28 = vmax.f32 %v809_v23, 0.0 }
 0x223   :  { %1429 = vmatmul.msk.bf16.gmra.mxu2 %vm457_vm3, %v672_v27  ;;  %v915_v29 = vpack.c.bf16 %v884_v28, %v883_v25  ;;  %v1128_v27 = vld [vmem:[%s2173_s1 + $0x18] sm:$0xff] }
 0x224   :  { %v604_v30 = vpop.f32.mrf.mxu1 }
 0x225   :  { %1455 = vmatmul.msk.bf16.gmra.mxu3 %vm457_vm3, %v915_v29  ;;  %v605_v32 = vadd.f32 %v604_v30, %v1688_v40 }
 0x226   :  { %v811_v31 = vpop.f32.mrf.mxu2 }
 0x227   :  { %v812_v34 = vadd.f32 %v811_v31, %v1766_v53  ;;  %v651_v37 = vmax.f32 %v605_v32, 0.0 }
 0x229   :  { %v885_v41 = vmax.f32 %v812_v34, 0.0 }
 0x22c   :  { %v606_v33 = vpop.f32.mrf.mxu1 }
 0x22d   :  { %v607_v35 = vadd.f32 %v606_v33, %v1688_v40 }
 0x22e   :  { %v813_v36 = vpop.f32.mrf.mxu2 }
 0x22f   :  { %v652_v38 = vmax.f32 %v607_v35, 0.0  ;;  %v814_v39 = vadd.f32 %v813_v36, %v1766_v53  ;;  %v1129_v35 = vld [vmem:[%s2173_s1 + $0x20] sm:$0xff] }
 0x231   :  { %v673_v42 = vpack.c.bf16 %v652_v38, %v651_v37  ;;  %v886_v43 = vmax.f32 %v814_v39, 0.0 }
 0x233   :  { %v916_v44 = vpack.c.bf16 %v886_v43, %v885_v41  ;;  %1430 = vmatmul.msk.bf16.gmra.mxu2 %vm457_vm3, %v673_v42  ;;  %v1130_v43 = vld [vmem:[%s2173_s1 + $0x28] sm:$0xff] }
 0x234   :  { %v609_v45 = vpop.f32.mrf.mxu1 }
 0x235   :  { %1456 = vmatmul.msk.bf16.gmra.mxu3 %vm457_vm3, %v916_v44  ;;  %v610_v47 = vadd.f32 %v609_v45, %v1688_v40 }
 0x236   :  { %v816_v46 = vpop.f32.mrf.mxu2 }
 0x237   :  { %v817_v49 = vadd.f32 %v816_v46, %v1766_v53  ;;  %v653_v52 = vmax.f32 %v610_v47, 0.0 }
 0x239   :  { %v887_v56 = vmax.f32 %v817_v49, 0.0 }
 0x23c   :  { %v611_v48 = vpop.f32.mrf.mxu1 }
 0x23d   :  { %v612_v50 = vadd.f32 %v611_v48, %v1688_v40 }
 0x23e   :  { %v818_v51 = vpop.f32.mrf.mxu2 }
 0x23f   :  { %v654_v54 = vmax.f32 %v612_v50, 0.0  ;;  %v819_v55 = vadd.f32 %v818_v51, %v1766_v53  ;;  %v1131_v51 = vld [vmem:[%s2173_s1 + $0x30] sm:$0xff] }
 0x241   :  { %v674_v57 = vpack.c.bf16 %v654_v54, %v653_v52  ;;  %v888_v58 = vmax.f32 %v819_v55, 0.0 }
 0x243   :  { %v917_v59 = vpack.c.bf16 %v888_v58, %v887_v56  ;;  %1431 = vmatmul.msk.bf16.gmra.mxu2 %vm457_vm3, %v674_v57 }
 0x244   :  { %v614_v60 = vpop.f32.mrf.mxu1 }
 0x245   :  { %1457 = vmatmul.msk.bf16.gmra.mxu3 %vm457_vm3, %v917_v59  ;;  %v615_v2 = vadd.f32 %v614_v60, %v1688_v40  ;;  %v1132_v59 = vld [vmem:[%s2173_s1 + $0x38] sm:$0xff] }
 0x246   :  { %v821_v62 = vpop.f32.mrf.mxu2 }
 0x247   :  { %v822_v4 = vadd.f32 %v821_v62, %v1766_v53  ;;  %v655_v7 = vmax.f32 %v615_v2, 0.0 }
 0x248   :  { %v1030_v63 = vpop.f32.mrf.mxu3 }
 0x249   :  { %v1031_v1 = vadd.f32 %v1828_v61, %v1030_v63  ;;  %v889_v12 = vmax.f32 %v822_v4, 0.0 }
 0x24b   :  { %v1163_v24 = vadd.f32 %v1125_v0, %v1031_v1 }
 0x24c   :  { %v616_v3 = vpop.f32.mrf.mxu1 }
 0x24d   :  { %1202 = vst.msk [vmem:[%s2174_s7] sm:$0xff] %vm1201_vm4, %v1163_v24  ;;  %v617_v5 = vadd.f32 %v616_v3, %v1688_v40  ;;  %v1133_v3 = vld [vmem:[%s2173_s1 + $0x40] sm:$0xff] }
 0x24e   :  { %v823_v6 = vpop.f32.mrf.mxu2 }
 0x24f   :  { %v656_v8 = vmax.f32 %v617_v5, 0.0  ;;  %v824_v9 = vadd.f32 %v823_v6, %v1766_v53 }
 0x250   :  { %v1032_v10 = vpop.f32.mrf.mxu3 }
 0x251   :  { %v675_v26 = vpack.c.bf16 %v656_v8, %v655_v7  ;;  %v890_v13 = vmax.f32 %v824_v9, 0.0  ;;  %v1033_v14 = vadd.f32 %v1828_v61, %v1032_v10  ;;  %v1134_v10 = vld [vmem:[%s2173_s1 + $0x48] sm:$0xff] }
 0x253   :  { %v918_v15 = vpack.c.bf16 %v890_v13, %v889_v12  ;;  %v1164_v16 = vadd.f32 %v1126_v11, %v1033_v14  ;;  %1432 = vmatmul.msk.bf16.gmra.mxu2 %vm457_vm3, %v675_v26 }
 0x255   :  { %1203 = vst.msk [vmem:[%s2174_s7 + $0x8] sm:$0xff] %vm1201_vm4, %v1164_v16  ;;  %1458 = vmatmul.msk.bf16.gmra.mxu3 %vm457_vm3, %v918_v15 }
 0x256   :  { %v826_v40 = vpop.f32.mrf.mxu2 }
 0x257   :  { %v827_v21 = vadd.f32 %v826_v40, %v1766_v53  ;;  %v1135_v40 = vld [vmem:[%s2173_s1 + $0x50] sm:$0xff] }
 0x258   :  { %v1035_v17 = vpop.f32.mrf.mxu3 }
 0x259   :  { %v1036_v19 = vadd.f32 %v1828_v61, %v1035_v17  ;;  %v891_v28 = vmax.f32 %v827_v21, 0.0 }
 0x25b   :  { %v1165_v20 = vadd.f32 %v1127_v18, %v1036_v19 }
 0x25d   :  { %1204 = vst.msk [vmem:[%s2174_s7 + $0x10] sm:$0xff] %vm1201_vm4, %v1165_v20 }
 0x25e   :  { %v828_v22 = vpop.f32.mrf.mxu2 }
 0x25f   :  { %v829_v23 = vadd.f32 %v828_v22, %v1766_v53 }
 0x260   :  { %v1037_v25 = vpop.f32.mrf.mxu3 }
 0x261   :  { %v892_v29 = vmax.f32 %v829_v23, 0.0  ;;  %v1038_v30 = vadd.f32 %v1828_v61, %v1037_v25  ;;  %v1136_v23 = vld [vmem:[%s2173_s1 + $0x58] sm:$0xff] }
 0x263   :  { %v919_v31 = vpack.c.bf16 %v892_v29, %v891_v28  ;;  %v1166_v32 = vadd.f32 %v1128_v27, %v1038_v30 }
 0x265   :  { %1205 = vst.msk [vmem:[%s2174_s7 + $0x18] sm:$0xff] %vm1201_vm4, %v1166_v32  ;;  %1459 = vmatmul.msk.bf16.gmra.mxu3 %vm457_vm3, %v919_v31 }
 0x266   :  { %v831_v33 = vpop.f32.mrf.mxu2 }
 0x267   :  { %v832_v38 = vadd.f32 %v831_v33, %v1766_v53  ;;  %v1137_v33 = vld [vmem:[%s2173_s1 + $0x60] sm:$0xff] }
 0x268   :  { %v1040_v34 = vpop.f32.mrf.mxu3 }
 0x269   :  { %v1041_v36 = vadd.f32 %v1828_v61, %v1040_v34  ;;  %v893_v44 = vmax.f32 %v832_v38, 0.0 }
 0x26b   :  { %v1167_v37 = vadd.f32 %v1129_v35, %v1041_v36 }
 0x26d   :  { %1206 = vst.msk [vmem:[%s2174_s7 + $0x20] sm:$0xff] %vm1201_vm4, %v1167_v37 }
 0x26e   :  { %v833_v39 = vpop.f32.mrf.mxu2 }
 0x26f   :  { %v834_v41 = vadd.f32 %v833_v39, %v1766_v53 }
 0x270   :  { %v1042_v42 = vpop.f32.mrf.mxu3 }
 0x271   :  { %v894_v45 = vmax.f32 %v834_v41, 0.0  ;;  %v1043_v46 = vadd.f32 %v1828_v61, %v1042_v42  ;;  %v1138_v41 = vld [vmem:[%s2173_s1 + $0x68] sm:$0xff] }
 0x273   :  { %v920_v47 = vpack.c.bf16 %v894_v45, %v893_v44  ;;  %v1168_v48 = vadd.f32 %v1130_v43, %v1043_v46 }
 0x275   :  { %1207 = vst.msk [vmem:[%s2174_s7 + $0x28] sm:$0xff] %vm1201_vm4, %v1168_v48  ;;  %1460 = vmatmul.msk.bf16.gmra.mxu3 %vm457_vm3, %v920_v47 }
 0x276   :  { %v836_v49 = vpop.f32.mrf.mxu2 }
 0x277   :  { %v837_v55 = vadd.f32 %v836_v49, %v1766_v53  ;;  %v1139_v49 = vld [vmem:[%s2173_s1 + $0x70] sm:$0xff] }
 0x278   :  { %v1045_v50 = vpop.f32.mrf.mxu3 }
 0x279   :  { %v1046_v52 = vadd.f32 %v1828_v61, %v1045_v50  ;;  %v895_v60 = vmax.f32 %v837_v55, 0.0 }
 0x27b   :  { %v1169_v54 = vadd.f32 %v1131_v51, %v1046_v52 }
 0x27d   :  { %1208 = vst.msk [vmem:[%s2174_s7 + $0x30] sm:$0xff] %vm1201_vm4, %v1169_v54 }
 0x27e   :  { %v838_v56 = vpop.f32.mrf.mxu2 }
 0x27f   :  { %v839_v57 = vadd.f32 %v838_v56, %v1766_v53 }
 0x280   :  { %v1047_v58 = vpop.f32.mrf.mxu3 }
 0x281   :  { %v896_v62 = vmax.f32 %v839_v57, 0.0  ;;  %v1048_v63 = vadd.f32 %v1828_v61, %v1047_v58  ;;  %v1140_v57 = vld [vmem:[%s2173_s1 + $0x78] sm:$0xff] }
 0x283   :  { %v921_v0 = vpack.c.bf16 %v896_v62, %v895_v60  ;;  %v1170_v1 = vadd.f32 %v1132_v59, %v1048_v63 }
 0x285   :  { %1209 = vst.msk [vmem:[%s2174_s7 + $0x38] sm:$0xff] %vm1201_vm4, %v1170_v1  ;;  %1461 = vmatmul.msk.bf16.gmra.mxu3 %vm457_vm3, %v921_v0 }
 0x286   :  { %v841_v2 = vpop.f32.mrf.mxu2 }
 0x287   :  { %v842_v6 = vadd.f32 %v841_v2, %v1766_v53  ;;  %v1141_v2 = vld [vmem:[%s2173_s1 + $0x80] sm:$0xff] }
 0x288   :  { %v1050_v24 = vpop.f32.mrf.mxu3 }
 0x289   :  { %v1051_v4 = vadd.f32 %v1828_v61, %v1050_v24  ;;  %v897_v11 = vmax.f32 %v842_v6, 0.0 }
 0x28b   :  { %v1171_v5 = vadd.f32 %v1133_v3, %v1051_v4 }
 0x28d   :  { %1210 = vst.msk [vmem:[%s2174_s7 + $0x40] sm:$0xff] %vm1201_vm4, %v1171_v5 }
 0x28e   :  { %v843_v7 = vpop.f32.mrf.mxu2 }
 0x28f   :  { %v844_v8 = vadd.f32 %v843_v7, %v1766_v53 }
 0x290   :  { %v1052_v9 = vpop.f32.mrf.mxu3 }
 0x291   :  { %v898_v12 = vmax.f32 %v844_v8, 0.0  ;;  %v1053_v26 = vadd.f32 %v1828_v61, %v1052_v9  ;;  %v1142_v8 = vld [vmem:[%s2173_s1 + $0x88] sm:$0xff] }
 0x293   :  { %v922_v13 = vpack.c.bf16 %v898_v12, %v897_v11  ;;  %v1172_v14 = vadd.f32 %v1134_v10, %v1053_v26 }
 0x295   :  { %1211 = vst.msk [vmem:[%s2174_s7 + $0x48] sm:$0xff] %vm1201_vm4, %v1172_v14  ;;  %1462 = vmatmul.msk.bf16.gmra.mxu3 %vm457_vm3, %v922_v13 }
 0x296   :  { %v846_v15 = vpop.f32.mrf.mxu2 }
 0x297   :  { %v847_v19 = vadd.f32 %v846_v15, %v1766_v53  ;;  %v1143_v15 = vld [vmem:[%s2173_s1 + $0x90] sm:$0xff] }
 0x298   :  { %v1055_v16 = vpop.f32.mrf.mxu3 }
 0x299   :  { %v1056_v17 = vadd.f32 %v1828_v61, %v1055_v16  ;;  %v899_v25 = vmax.f32 %v847_v19, 0.0 }
 0x29b   :  { %v1173_v18 = vadd.f32 %v1135_v40, %v1056_v17 }
 0x29d   :  { %1212 = vst.msk [vmem:[%s2174_s7 + $0x50] sm:$0xff] %vm1201_vm4, %v1173_v18 }
 0x29e   :  { %v848_v20 = vpop.f32.mrf.mxu2 }
 0x29f   :  { %v849_v21 = vadd.f32 %v848_v20, %v1766_v53 }
 0x2a0   :  { %v1057_v22 = vpop.f32.mrf.mxu3 }
 0x2a1   :  { %v900_v27 = vmax.f32 %v849_v21, 0.0  ;;  %v1058_v28 = vadd.f32 %v1828_v61, %v1057_v22  ;;  %v1144_v21 = vld [vmem:[%s2173_s1 + $0x98] sm:$0xff] }
 0x2a3   :  { %v923_v29 = vpack.c.bf16 %v900_v27, %v899_v25  ;;  %v1174_v30 = vadd.f32 %v1136_v23, %v1058_v28 }
 0x2a5   :  { %1213 = vst.msk [vmem:[%s2174_s7 + $0x58] sm:$0xff] %vm1201_vm4, %v1174_v30  ;;  %1463 = vmatmul.msk.bf16.gmra.mxu3 %vm457_vm3, %v923_v29 }
 0x2a6   :  { %v851_v31 = vpop.f32.mrf.mxu2 }
 0x2a7   :  { %v852_v36 = vadd.f32 %v851_v31, %v1766_v53 }
 0x2a8   :  { %v1060_v32 = vpop.f32.mrf.mxu3 }
 0x2a9   :  { %v1061_v34 = vadd.f32 %v1828_v61, %v1060_v32  ;;  %v901_v42 = vmax.f32 %v852_v36, 0.0 }
 0x2ab   :  { %v1175_v35 = vadd.f32 %v1137_v33, %v1061_v34  ;;  %v1146_v33 = vld [vmem:[%s2173_s1 + $0xa8] sm:$0xff] }
 0x2ad   :  { %1214 = vst.msk [vmem:[%s2174_s7 + $0x60] sm:$0xff] %vm1201_vm4, %v1175_v35 }
 0x2ae   :  { %v853_v37 = vpop.f32.mrf.mxu2 }
 0x2af   :  { %v854_v38 = vadd.f32 %v853_v37, %v1766_v53  ;;  %v1147_v37 = vld [vmem:[%s2173_s1 + $0xb0] sm:$0xff] }
 0x2b0   :  { %v1062_v39 = vpop.f32.mrf.mxu3 }
 0x2b1   :  { %v902_v43 = vmax.f32 %v854_v38, 0.0  ;;  %v1063_v44 = vadd.f32 %v1828_v61, %v1062_v39 }
 0x2b3   :  { %v924_v45 = vpack.c.bf16 %v902_v43, %v901_v42  ;;  %v1176_v46 = vadd.f32 %v1138_v41, %v1063_v44  ;;  %v1148_v42 = vld [vmem:[%s2173_s1 + $0xb8] sm:$0xff] }
 0x2b5   :  { %1215 = vst.msk [vmem:[%s2174_s7 + $0x68] sm:$0xff] %vm1201_vm4, %v1176_v46  ;;  %1464 = vmatmul.msk.bf16.gmra.mxu3 %vm457_vm3, %v924_v45  ;;  %v1149_v46 = vld [vmem:[%s2173_s1 + $0xc0] sm:$0xff] }
 0x2b6   :  { %v856_v47 = vpop.f32.mrf.mxu2 }
 0x2b7   :  { %v857_v52 = vadd.f32 %v856_v47, %v1766_v53 }
 0x2b8   :  { %v1065_v48 = vpop.f32.mrf.mxu3 }
 0x2b9   :  { %v1066_v50 = vadd.f32 %v1828_v61, %v1065_v48  ;;  %v903_v58 = vmax.f32 %v857_v52, 0.0 }
 0x2bb   :  { %v1177_v51 = vadd.f32 %v1139_v49, %v1066_v50  ;;  %v1150_v50 = vld [vmem:[%s2173_s1 + $0xc8] sm:$0xff] }
 0x2bd   :  { %1216 = vst.msk [vmem:[%s2174_s7 + $0x70] sm:$0xff] %vm1201_vm4, %v1177_v51 }
 0x2be   :  { %v858_v54 = vpop.f32.mrf.mxu2 }
 0x2bf   :  { %v859_v55 = vadd.f32 %v858_v54, %v1766_v53 }
 0x2c0   :  { %v1067_v56 = vpop.f32.mrf.mxu3 }
 0x2c1   :  { %v904_v59 = vmax.f32 %v859_v55, 0.0  ;;  %v1068_v60 = vadd.f32 %v1828_v61, %v1067_v56  ;;  %v1151_v55 = vld [vmem:[%s2173_s1 + $0xd0] sm:$0xff] }
 0x2c3   :  { %v925_v62 = vpack.c.bf16 %v904_v59, %v903_v58  ;;  %v1178_v63 = vadd.f32 %v1140_v57, %v1068_v60  ;;  %v1152_v59 = vld [vmem:[%s2173_s1 + $0xd8] sm:$0xff] }
 0x2c5   :  { %1217 = vst.msk [vmem:[%s2174_s7 + $0x78] sm:$0xff] %vm1201_vm4, %v1178_v63  ;;  %1465 = vmatmul.msk.bf16.gmra.mxu3 %vm457_vm3, %v925_v62 }
 0x2c6   :  { %v861_v0 = vpop.f32.mrf.mxu2 }
 0x2c7   :  { %v862_v4 = vadd.f32 %v861_v0, %v1766_v53  ;;  %v1153_v0 = vld [vmem:[%s2173_s1 + $0xe0] sm:$0xff] }
 0x2c8   :  { %v1070_v1 = vpop.f32.mrf.mxu3 }
 0x2c9   :  { %v1071_v24 = vadd.f32 %v1828_v61, %v1070_v1  ;;  %v905_v9 = vmax.f32 %v862_v4, 0.0 }
 0x2cb   :  { %v1179_v3 = vadd.f32 %v1141_v2, %v1071_v24 }
 0x2cd   :  { %1218 = vst.msk [vmem:[%s2174_s7 + $0x80] sm:$0xff] %vm1201_vm4, %v1179_v3  ;;  %v1154_v3 = vld [vmem:[%s2173_s1 + $0xe8] sm:$0xff] }
 0x2ce   :  { %v863_v5 = vpop.f32.mrf.mxu2 }
 0x2cf   :  { %v864_v6 = vadd.f32 %v863_v5, %v1766_v53 }
 0x2d0   :  { %v1072_v7 = vpop.f32.mrf.mxu3 }
 0x2d1   :  { %v906_v10 = vmax.f32 %v864_v6, 0.0  ;;  %v1073_v11 = vadd.f32 %v1828_v61, %v1072_v7  ;;  %v1155_v7 = vld [vmem:[%s2173_s1 + $0xf0] sm:$0xff] }
 0x2d3   :  { %v926_v12 = vpack.c.bf16 %v906_v10, %v905_v9  ;;  %v1180_v26 = vadd.f32 %v1142_v8, %v1073_v11  ;;  %v1156_v11 = vld [vmem:[%s2173_s1 + $0xf8] sm:$0xff] }
 0x2d5   :  { %1219 = vst.msk [vmem:[%s2174_s7 + $0x88] sm:$0xff] %vm1201_vm4, %v1180_v26  ;;  %1466 = vmatmul.msk.bf16.gmra.mxu3 %vm457_vm3, %v926_v12 }
 0x2d6   :  { %v866_v13 = vpop.f32.mrf.mxu2 }
 0x2d7   :  { %v867_v17 = vadd.f32 %v866_v13, %v1766_v53 }
 0x2d8   :  { %v1075_v14 = vpop.f32.mrf.mxu3 }
 0x2d9   :  { %v1076_v16 = vadd.f32 %v1828_v61, %v1075_v14  ;;  %v907_v22 = vmax.f32 %v867_v17, 0.0  ;;  %v1157_v14 = vld [vmem:[%s2173_s1 + $0x100] sm:$0xff]  ;;  %v1158_v17 = vld [vmem:[%s2173_s1 + $0x108] sm:$0xff] }
 0x2db   :  { %v1181_v40 = vadd.f32 %v1143_v15, %v1076_v16 }
 0x2dd   :  { %1220 = vst.msk [vmem:[%s2174_s7 + $0x90] sm:$0xff] %vm1201_vm4, %v1181_v40 }
 0x2de   :  { %v868_v18 = vpop.f32.mrf.mxu2 }
 0x2df   :  { %v869_v19 = vadd.f32 %v868_v18, %v1766_v53  ;;  %v1145_v53 = vld [vmem:[%s2173_s1 + $0xa0] sm:$0xff] }
 0x2e0   :  { %v1077_v20 = vpop.f32.mrf.mxu3 }
 0x2e1   :  { %v908_v23 = vmax.f32 %v869_v19, 0.0  ;;  %v1078_v25 = vadd.f32 %v1828_v61, %v1077_v20 }
 0x2e3   :  { %v927_v27 = vpack.c.bf16 %v908_v23, %v907_v22  ;;  %v1182_v28 = vadd.f32 %v1144_v21, %v1078_v25  ;;  %v1159_v21 = vld [vmem:[%s2173_s1 + $0x110] sm:$0xff] }
 0x2e5   :  { %1221 = vst.msk [vmem:[%s2174_s7 + $0x98] sm:$0xff] %vm1201_vm4, %v1182_v28  ;;  %1467 = vmatmul.msk.bf16.gmra.mxu3 %vm457_vm3, %v927_v27  ;;  %v1160_v27 = vld [vmem:[%s2173_s1 + $0x118] sm:$0xff] }
 0x2e8   :  { %v1080_v29 = vpop.f32.mrf.mxu3 }
 0x2e9   :  { %v1081_v30 = vadd.f32 %v1828_v61, %v1080_v29 }
 0x2eb   :  { %v1183_v31 = vadd.f32 %v1145_v53, %v1081_v30  ;;  %v1161_v30 = vld [vmem:[%s2173_s1 + $0x120] sm:$0xff] }
 0x2ed   :  { %1222 = vst.msk [vmem:[%s2174_s7 + $0xa0] sm:$0xff] %vm1201_vm4, %v1183_v31 }
 0x2f0   :  { %v1082_v32 = vpop.f32.mrf.mxu3 }
 0x2f1   :  { %v1083_v34 = vadd.f32 %v1828_v61, %v1082_v32 }
 0x2f3   :  { %v1184_v35 = vadd.f32 %v1146_v33, %v1083_v34  ;;  %v1162_v34 = vld [vmem:[%s2173_s1 + $0x128] sm:$0xff] }
 0x2f5   :  { %1223 = vst.msk [vmem:[%s2174_s7 + $0xa8] sm:$0xff] %vm1201_vm4, %v1184_v35 }
 0x2f8   :  { %v1085_v36 = vpop.f32.mrf.mxu3 }
 0x2f9   :  { %v1086_v38 = vadd.f32 %v1828_v61, %v1085_v36 }
 0x2fb   :  { %v1185_v39 = vadd.f32 %v1147_v37, %v1086_v38 }
 0x2fd   :  { %1224 = vst.msk [vmem:[%s2174_s7 + $0xb0] sm:$0xff] %vm1201_vm4, %v1185_v39 }
 0x300   :  { %v1087_v41 = vpop.f32.mrf.mxu3 }
 0x301   :  { %v1088_v43 = vadd.f32 %v1828_v61, %v1087_v41 }
 0x303   :  { %v1186_v44 = vadd.f32 %v1148_v42, %v1088_v43 }
 0x305   :  { %1225 = vst.msk [vmem:[%s2174_s7 + $0xb8] sm:$0xff] %vm1201_vm4, %v1186_v44 }
 0x308   :  { %v1090_v45 = vpop.f32.mrf.mxu3 }
 0x309   :  { %v1091_v47 = vadd.f32 %v1828_v61, %v1090_v45 }
 0x30b   :  { %v1187_v48 = vadd.f32 %v1149_v46, %v1091_v47 }
 0x30d   :  { %1226 = vst.msk [vmem:[%s2174_s7 + $0xc0] sm:$0xff] %vm1201_vm4, %v1187_v48 }
 0x310   :  { %v1092_v49 = vpop.f32.mrf.mxu3 }
 0x311   :  { %v1093_v51 = vadd.f32 %v1828_v61, %v1092_v49 }
 0x313   :  { %v1188_v52 = vadd.f32 %v1150_v50, %v1093_v51 }
 0x315   :  { %1227 = vst.msk [vmem:[%s2174_s7 + $0xc8] sm:$0xff] %vm1201_vm4, %v1188_v52 }
 0x318   :  { %v1095_v54 = vpop.f32.mrf.mxu3 }
 0x319   :  { %v1096_v56 = vadd.f32 %v1828_v61, %v1095_v54 }
 0x31b   :  { %v1189_v57 = vadd.f32 %v1151_v55, %v1096_v56 }
 0x31d   :  { %1228 = vst.msk [vmem:[%s2174_s7 + $0xd0] sm:$0xff] %vm1201_vm4, %v1189_v57 }
 0x320   :  { %v1097_v58 = vpop.f32.mrf.mxu3 }
 0x321   :  { %v1098_v60 = vadd.f32 %v1828_v61, %v1097_v58 }
 0x323   :  { %v1190_v62 = vadd.f32 %v1152_v59, %v1098_v60 }
 0x325   :  { %1229 = vst.msk [vmem:[%s2174_s7 + $0xd8] sm:$0xff] %vm1201_vm4, %v1190_v62 }
 0x328   :  { %v1100_v63 = vpop.f32.mrf.mxu3 }
 0x329   :  { %v1101_v1 = vadd.f32 %v1828_v61, %v1100_v63 }
 0x32b   :  { %v1191_v2 = vadd.f32 %v1153_v0, %v1101_v1 }
 0x32d   :  { %1230 = vst.msk [vmem:[%s2174_s7 + $0xe0] sm:$0xff] %vm1201_vm4, %v1191_v2 }
 0x330   :  { %v1102_v24 = vpop.f32.mrf.mxu3 }
 0x331   :  { %v1103_v4 = vadd.f32 %v1828_v61, %v1102_v24 }
 0x333   :  { %v1192_v5 = vadd.f32 %v1154_v3, %v1103_v4 }
 0x335   :  { %1231 = vst.msk [vmem:[%s2174_s7 + $0xe8] sm:$0xff] %vm1201_vm4, %v1192_v5 }
 0x338   :  { %v1105_v6 = vpop.f32.mrf.mxu3 }
 0x339   :  { %v1106_v8 = vadd.f32 %v1828_v61, %v1105_v6 }
 0x33b   :  { %v1193_v9 = vadd.f32 %v1155_v7, %v1106_v8 }
 0x33d   :  { %1232 = vst.msk [vmem:[%s2174_s7 + $0xf0] sm:$0xff] %vm1201_vm4, %v1193_v9 }
 0x340   :  { %v1107_v10 = vpop.f32.mrf.mxu3 }
 0x341   :  { %v1108_v12 = vadd.f32 %v1828_v61, %v1107_v10 }
 0x343   :  { %v1194_v26 = vadd.f32 %v1156_v11, %v1108_v12 }
 0x345   :  { %1233 = vst.msk [vmem:[%s2174_s7 + $0xf8] sm:$0xff] %vm1201_vm4, %v1194_v26 }
 0x348   :  { %v1110_v13 = vpop.f32.mrf.mxu3 }
 0x349   :  { %v1111_v15 = vadd.f32 %v1828_v61, %v1110_v13 }
 0x34b   :  { %v1195_v16 = vadd.f32 %v1157_v14, %v1111_v15 }
 0x34d   :  { %1234 = vst.msk [vmem:[%s2174_s7 + $0x100] sm:$0xff] %vm1201_vm4, %v1195_v16 }
 0x350   :  { %v1112_v40 = vpop.f32.mrf.mxu3 }
 0x351   :  { %v1113_v18 = vadd.f32 %v1828_v61, %v1112_v40 }
 0x353   :  { %v1196_v19 = vadd.f32 %v1158_v17, %v1113_v18 }
 0x355   :  { %1235 = vst.msk [vmem:[%s2174_s7 + $0x108] sm:$0xff] %vm1201_vm4, %v1196_v19 }
 0x358   :  { %v1115_v20 = vpop.f32.mrf.mxu3 }
 0x359   :  { %v1116_v22 = vadd.f32 %v1828_v61, %v1115_v20 }
 0x35b   :  { %v1197_v23 = vadd.f32 %v1159_v21, %v1116_v22 }
 0x35d   :  { %1236 = vst.msk [vmem:[%s2174_s7 + $0x110] sm:$0xff] %vm1201_vm4, %v1197_v23 }
 0x360   :  { %v1117_v25 = vpop.f32.mrf.mxu3 }
 0x361   :  { %v1118_v28 = vadd.f32 %v1828_v61, %v1117_v25 }
 0x363   :  { %v1198_v29 = vadd.f32 %v1160_v27, %v1118_v28 }
 0x365   :  { %1237 = vst.msk [vmem:[%s2174_s7 + $0x118] sm:$0xff] %vm1201_vm4, %v1198_v29 }
 0x368   :  { %v1120_v53 = vpop.f32.mrf.mxu3 }
 0x369   :  { %v1121_v31 = vadd.f32 %v1828_v61, %v1120_v53 }
 0x36b   :  { %v1199_v32 = vadd.f32 %v1161_v30, %v1121_v31 }
 0x36d   :  { %1238 = vst.msk [vmem:[%s2174_s7 + $0x120] sm:$0xff] %vm1201_vm4, %v1199_v32 }
 0x370   :  { %v1122_v33 = vpop.f32.mrf.mxu3 }
 0x371   :  { %v1123_v35 = vadd.f32 %v1828_v61, %v1122_v33 }
 0x373   :  { %v1200_v36 = vadd.f32 %v1162_v34, %v1123_v35 }
 0x375   :  { %1239 = vst.msk [vmem:[%s2174_s7 + $0x128] sm:$0xff] %vm1201_vm4, %v1200_v36 }

</bundles_post_ra>
